<compile_context>
chip_gen: v7x
topology: tpu7x:2x2x1
jax: 0.10.0
libtpu: 0.0.40
codegen_flags: <defaults>
</compile_context>

<pallas_src>
import jax
import jax.numpy as jnp
from jax import lax
from jax.experimental import pallas as pl
from jax.experimental.pallas import tpu as pltpu

_LANE = 128
_SUBLANE = 8


def _round_up(x: int, m: int) -> int:
    return ((x + m - 1) // m) * m


def _logic_not_kernel(x_ref, w1_ref, w2_ref, b2_ref, o_ref):
    # hidden = relu(x @ W1^T): contract in_dim (last dim of both operands),
    # accumulate in f32 on the MXU.
    h = lax.dot_general(
        x_ref[...], w1_ref[...],
        dimension_numbers=(((1,), (1,)), ((), ())),
        preferred_element_type=jnp.float32,
    )
    h = jnp.maximum(h, 0.0)
    # out = hidden @ W2^T + b2: contract hidden dim (last dim of both operands).
    out = lax.dot_general(
        h.astype(w2_ref.dtype), w2_ref[...],
        dimension_numbers=(((1,), (1,)), ((), ())),
        preferred_element_type=jnp.float32,
    )
    out = out + b2_ref[...]          # (1, O) f32 bias broadcasts over batch rows
    o_ref[...] = out.astype(o_ref.dtype)


def prepare_logic_not_params(w1, w2, b2, *, compute_dtype=jnp.float32):
    """Pad parameters once, outside the per-call hot path.

    w1: (hidden_dim, in_dim)   [hidden layer, no bias]
    w2: (out_dim, hidden_dim)  [output layer]
    b2: (out_dim,)
    Hidden / output feature dims are zero-padded to the 128-lane width so the
    second matmul, the bias add and the output stores are lane-dense
    (unmasked vst).  Zero padding is exact: relu(0)=0 feeds zero W2 columns,
    and the padded output columns are trimmed by the wrapper.
    """
    h_dim, in_dim = w1.shape
    out_dim, h_dim_w2 = w2.shape
    assert h_dim_w2 == h_dim and b2.shape == (out_dim,)

    cd = jnp.dtype(compute_dtype)
    H = _round_up(h_dim, _LANE)
    O = _round_up(out_dim, _LANE)

    w1p = jnp.zeros((H, in_dim), cd).at[:h_dim, :].set(w1.astype(cd))
    w2p = jnp.zeros((O, H), cd).at[:out_dim, :h_dim].set(w2.astype(cd))
    b2p = jnp.zeros((1, O), jnp.float32).at[0, :out_dim].set(b2.astype(jnp.float32))

    return {
        "w1p": w1p, "w2p": w2p, "b2p": b2p,
        "in_dim": in_dim, "h_dim": h_dim, "out_dim": out_dim,
        "H": H, "O": O, "compute_dtype": cd,
    }


def _pick_tm(M: int, cap: int = 1024) -> int:
    """Batch tile: multiple of 8, <= cap, and >= 2 grid steps when M allows
    (so the 'parallel' axis shards across v7x's two TensorCores)."""
    m8 = _round_up(M, _SUBLANE)
    if m8 <= 2 * _SUBLANE:
        return m8                      # tiny batch: single tile
    return max(_SUBLANE, min(cap, _round_up(pl.cdiv(m8, 2), _SUBLANE)))


def logic_not_forward(x, params, *, tm=None, trim_output=True):
    """x: (M, in_dim).  params: output of prepare_logic_not_params.
    Returns (M, out_dim) (or the lane-padded (M, O) block if trim_output=False).
    Call under jit so the trim slice fuses into the consumer."""
    M, in_dim = x.shape
    assert in_dim == params["in_dim"]

    w1p, w2p, b2p = params["w1p"], params["w2p"], params["b2p"]
    H, O, out_dim = params["H"], params["O"], params["out_dim"]
    cd = params["compute_dtype"]

    out_dtype = x.dtype
    if x.dtype != cd:
        x = x.astype(cd)               # fuses with the producer under jit

    if tm is None:
        tm = _pick_tm(M)
    tm = max(_SUBLANE, _round_up(tm, _SUBLANE))

    grid = (pl.cdiv(M, tm),)           # ragged last block: no batch pad of x

    out = pl.pallas_call(
        _logic_not_kernel,
        out_shape=jax.ShapeDtypeStruct((M, O), out_dtype),
        grid_spec=pltpu.PrefetchScalarGridSpec(
            num_scalar_prefetch=0,
            grid=grid,
            in_specs=[
                # x tile: double-buffered (default) so DMA overlaps compute.
                pl.BlockSpec((tm, in_dim), lambda i: (i, 0)),
                # Resident weights/bias: constant index map, single buffer.
                pl.BlockSpec((H, in_dim), lambda i: (0, 0),
                             pipeline_mode=pl.Buffered(1)),
                pl.BlockSpec((O, H), lambda i: (0, 0),
                             pipeline_mode=pl.Buffered(1)),
                pl.BlockSpec((1, O), lambda i: (0, 0),
                             pipeline_mode=pl.Buffered(1)),
            ],
            out_specs=pl.BlockSpec((tm, O), lambda i: (i, 0)),
        ),
        compiler_params=pltpu.CompilerParams(
            dimension_semantics=("parallel",),
            # Explicit scoped-VMEM request: v5e default is only 16 MiB; this
            # working set (~a few MiB at tm=1024) fits every generation.
            vmem_limit_bytes=32 * 1024 * 1024,
        ),
    )(x, w1p, w2p, b2p)

    if trim_output:
        return out[:, :out_dim]        # fused into the consumer under jit
    return out


if __name__ == "__main__":
    input_dim = 64
    output_dim = 64
    batch = 8

    key = jax.random.PRNGKey(0)
    kx, k1, k2, kb = jax.random.split(key, 4)

    # Deterministic parameter init (uniform, PyTorch-Linear-like scale).
    bound = 1.0 / (input_dim ** 0.5)
    x = jax.random.normal(kx, (batch, input_dim), dtype=jnp.float32)
    w1 = jax.random.uniform(k1, (output_dim, input_dim), jnp.float32, -bound, bound)
    w2 = jax.random.uniform(k2, (output_dim, input_dim), jnp.float32, -bound, bound)
    b2 = jax.random.uniform(kb, (output_dim,), jnp.float32, -bound, bound)

    # Pure-JAX reference of the fused forward.
    y_ref = jnp.maximum(x @ w1.T, 0.0) @ w2.T + b2

    # f32 compute path (exact).  Params padded once, outside the hot path.
    params_f32 = prepare_logic_not_params(w1, w2, b2, compute_dtype=jnp.float32)
    fwd_f32 = jax.jit(lambda xx: logic_not_forward(xx, params_f32))
    y = jax.block_until_ready(fwd_f32(x))
    assert y.shape == (batch, output_dim)
    assert jnp.allclose(y, y_ref, atol=1e-5, rtol=1e-5)

    # bf16 compute path (halved x/W HBM traffic, fast MXU), f32 accumulation.
    params_bf16 = prepare_logic_not_params(w1, w2, b2, compute_dtype=jnp.bfloat16)
    fwd_bf16 = jax.jit(lambda xx: logic_not_forward(xx, params_bf16))
    y_bf16 = jax.block_until_ready(fwd_bf16(x))
    assert y_bf16.shape == (batch, output_dim)
    assert jnp.allclose(y_bf16, y_ref, atol=5e-2, rtol=5e-2)

    print("KERNEL_OK")
</pallas_src>

<mosaic_0001>
module attributes {stable_mosaic.version = 11 : i64} {
  func.func @_logic_not_kernel(%arg0: i32, %arg1: memref<8x64xf32, #tpu.memory_space<vmem>>, %arg2: memref<128x64xf32, #tpu.memory_space<vmem>>, %arg3: memref<128x128xf32, #tpu.memory_space<vmem>>, %arg4: memref<1x128xf32, #tpu.memory_space<vmem>>, %arg5: memref<8x128xf32, #tpu.memory_space<vmem>>) attributes {dimension_semantics = [#tpu.dimension_semantics<parallel>], iteration_bounds = array<i64: 1>, scalar_prefetch = 0 : i64, scratch_operands = 0 : i64, tpu.core_type = #tpu.core_type<tc>, window_params = [{transform_indices = @transform_0, window_bounds = array<i64: 8, 64>}, {pipeline_mode = #tpu.pipeline_mode<synchronous>, transform_indices = @transform_1, window_bounds = array<i64: 128, 64>}, {pipeline_mode = #tpu.pipeline_mode<synchronous>, transform_indices = @transform_2, window_bounds = array<i64: 128, 128>}, {pipeline_mode = #tpu.pipeline_mode<synchronous>, transform_indices = @transform_3, window_bounds = array<i64: 1, 128>}, {transform_indices = @transform_4, window_bounds = array<i64: 8, 128>}]} {
    %c0 = arith.constant 0 : index
    %c0_0 = arith.constant 0 : index
    %0 = vector.load %arg1[%c0, %c0_0] : memref<8x64xf32, #tpu.memory_space<vmem>>, vector<8x64xf32>
    %c0_1 = arith.constant 0 : index
    %c0_2 = arith.constant 0 : index
    %1 = vector.load %arg2[%c0_1, %c0_2] : memref<128x64xf32, #tpu.memory_space<vmem>>, vector<128x64xf32>
    %cst = arith.constant dense<0.000000e+00> : vector<8x128xf32>
    %2 = tpu.matmul %0, %1, %cst {dimension_numbers = #tpu.dot_dimension_numbers<[1], [1], [0], [0], [0, 0, 1, 0], [], []>} : vector<8x64xf32>, vector<128x64xf32>, vector<8x128xf32> -> vector<8x128xf32>
    %cst_3 = arith.constant 0.000000e+00 : f32
    %3 = vector.broadcast %cst_3 : f32 to vector<8x128xf32>
    %4 = arith.maximumf %2, %3 : vector<8x128xf32>
    %c0_4 = arith.constant 0 : index
    %c0_5 = arith.constant 0 : index
    %5 = vector.load %arg3[%c0_4, %c0_5] : memref<128x128xf32, #tpu.memory_space<vmem>>, vector<128x128xf32>
    %cst_6 = arith.constant dense<0.000000e+00> : vector<8x128xf32>
    %6 = tpu.matmul %4, %5, %cst_6 {dimension_numbers = #tpu.dot_dimension_numbers<[1], [1], [0], [0], [0, 0, 1, 0], [], []>} : vector<8x128xf32>, vector<128x128xf32>, vector<8x128xf32> -> vector<8x128xf32>
    %c0_7 = arith.constant 0 : index
    %c0_8 = arith.constant 0 : index
    %7 = vector.load %arg4[%c0_7, %c0_8] : memref<1x128xf32, #tpu.memory_space<vmem>>, vector<1x128xf32>
    %8 = vector.broadcast %7 : vector<1x128xf32> to vector<8x128xf32>
    %9 = arith.addf %6, %8 : vector<8x128xf32>
    %c0_9 = arith.constant 0 : index
    %c0_10 = arith.constant 0 : index
    %10 = vector.load %arg5[%c0_9, %c0_10] : memref<8x128xf32, #tpu.memory_space<vmem>>, vector<8x128xf32>
    tpu.vector_store %arg5[%c0_9, %c0_10], %9 {strides = array<i32>} : memref<8x128xf32, #tpu.memory_space<vmem>>, vector<8x128xf32>,
    return
  }
  func.func @transform_0(%arg0: i32) -> (i32, i32) {
    %c0_i32 = arith.constant 0 : i32
    %c0_i32_0 = arith.constant 0 : i32
    return %arg0, %c0_i32 : i32, i32
  }
  func.func @transform_1(%arg0: i32) -> (i32, i32) {
    %c0_i32 = arith.constant 0 : i32
    %c0_i32_0 = arith.constant 0 : i32
    %c0_i32_1 = arith.constant 0 : i32
    return %c0_i32, %c0_i32_0 : i32, i32
  }
  func.func @transform_2(%arg0: i32) -> (i32, i32) {
    %c0_i32 = arith.constant 0 : i32
    %c0_i32_0 = arith.constant 0 : i32
    %c0_i32_1 = arith.constant 0 : i32
    return %c0_i32, %c0_i32_0 : i32, i32
  }
  func.func @transform_3(%arg0: i32) -> (i32, i32) {
    %c0_i32 = arith.constant 0 : i32
    %c0_i32_0 = arith.constant 0 : i32
    %c0_i32_1 = arith.constant 0 : i32
    return %c0_i32, %c0_i32_0 : i32, i32
  }
  func.func @transform_4(%arg0: i32) -> (i32, i32) {
    %c0_i32 = arith.constant 0 : i32
    %c0_i32_0 = arith.constant 0 : i32
    return %arg0, %c0_i32 : i32, i32
  }
}

</mosaic_0001>

<bundles_post_ra>
// kernel: _lambda_.1
= control target key start
LH: loop header
LB: loop body
LE: loop exit
PB: predicated region body
PF: predicated region fallthrough
CT: control target
= control target key end

     0   :  { %9 = vsyncpa [#allocation3], 0  ;;  %s718_s0 = inlined_call_operand.hbm [shape: f32[8,64], index: 0, kind: input, shape index: {}]   ;;  %s719_s1 = inlined_call_operand.hbm [shape: f32[128,64], index: 1, kind: input, shape index: {}]   ;;  %s720_s2 = inlined_call_operand.hbm [shape: f32[128,128], index: 2, kind: input, shape index: {}]   ;;  %s721_s3 = inlined_call_operand.vmem [shape: f32[1,128], index: 3, kind: input, shape index: {}]   ;;  %s722_s4 = inlined_call_operand.hbm [shape: f32[8,128], index: 4, kind: output, shape index: {}]  }
   0x1   :  { %10 = vsyncpa [#allocation6], 0 }
   0x2   :  { %11 = vsyncpa [#allocation4], 0  ;;  %s588_s15 = smov [#allocation5]   ;;  %s494_s19 = scalar_lea.hbm %s719_s1, 2048 }
   0x3   :  { %s27_s16 = sshll.u32 %s588_s15, 4  ;;  %p495_p0 = scmp.ne.s32.totalorder %s719_s1, %s494_s19  ;;  %s28_s16 = int_to_ptr.vmem [resolvable:$true] %s27_s16 }
   0x4   :  { %p498_p1 = scmp.lt.u32.totalorder %s494_s19, %s719_s1 }
   0x6   :  { %p500_p2 = pnand %p498_p1, %p495_p0 }
   0x8   :  { %503 = shalt.err (!%p500_p2)
}
   0x9   :  { %s504_s24 = scalar_lea.vmem %s28_s16, 2048  ;;  %p509_p4 = scmp.lt.s32.totalorder %s28_s16, %s28_s16 }
   0xa   :  { %p505_p3 = scmp.ne.s32.totalorder %s28_s16, %s504_s24  ;;  %p510_p5 = scmp.lt.s32.totalorder %s504_s24, %s504_s24 }
   0xc   :  { %p511_p6 = por %p510_p5, %p509_p4 }
   0xe   :  { %p512_p7 = pnand %p511_p6, %p505_p3 }
  0x10   :  { %515 = shalt.err (!%p512_p7)
}
  0x11   :  { %s589_s25 = smov 128   ;;  %s590_s26 = smov 8  }
  0x12   :  { %33 = dma.hbm_to_vmem [thread:$0]  %s719_s1, 2048, %s28_s16, [#allocation6], %s589_s25, %s589_s25, %s590_s26  }
  0x13   :  { %s591_s29 = smov [#allocation2]   ;;  %s592_s5 = smov [#allocation7]  }
  0x14   :  { %s18_s30 = sshll.u32 %s591_s29, 4  ;;  %s39_s6 = sshll.u32 %s592_s5, 4  ;;  %s19_s30 = int_to_ptr.vmem [resolvable:$true] %s18_s30  ;;  %s40_s6 = int_to_ptr.vmem [resolvable:$true] %s39_s6 }
  0x15   :  { %s516_s9 = scalar_lea.hbm %s718_s0, 128 }
  0x16   :  { %p517_p8 = scmp.ne.s32.totalorder %s718_s0, %s516_s9  ;;  %p520_p9 = scmp.lt.u32.totalorder %s516_s9, %s718_s0 }
  0x18   :  { %p522_p10 = pnand %p520_p9, %p517_p8 }
  0x1a   :  { %525 = shalt.err (!%p522_p10)
}
  0x1b   :  { %s526_s1 = scalar_lea.vmem %s19_s30, 128  ;;  %p531_p12 = scmp.lt.s32.totalorder %s19_s30, %s19_s30 }
  0x1c   :  { %p527_p11 = scmp.ne.s32.totalorder %s19_s30, %s526_s1  ;;  %p532_p13 = scmp.lt.s32.totalorder %s526_s1, %s526_s1 }
  0x1e   :  { %p533_p0 = por %p532_p13, %p531_p12 }
  0x20   :  { %p534_p1 = pnand %p533_p0, %p527_p11 }
  0x22   :  { %537 = shalt.err (!%p534_p1)
}
  0x23   :  { %21 = dma.hbm_to_vmem [thread:$0]  %s718_s0, 128, %s19_s30, [#allocation3]  }
  0x24   :  { %s538_s18 = scalar_lea.hbm %s720_s2, 2048 }
  0x25   :  { %p539_p2 = scmp.ne.s32.totalorder %s720_s2, %s538_s18  ;;  %p542_p3 = scmp.lt.u32.totalorder %s538_s18, %s720_s2 }
  0x27   :  { %p544_p4 = pnand %p542_p3, %p539_p2 }
  0x29   :  { %547 = shalt.err (!%p544_p4)
}
  0x2a   :  { %s548_s23 = scalar_lea.vmem %s40_s6, 2048  ;;  %p553_p6 = scmp.lt.s32.totalorder %s40_s6, %s40_s6 }
  0x2b   :  { %p549_p5 = scmp.ne.s32.totalorder %s40_s6, %s548_s23  ;;  %p554_p7 = scmp.lt.s32.totalorder %s548_s23, %s548_s23 }
  0x2d   :  { %p555_p8 = por %p554_p7, %p553_p6 }
  0x2f   :  { %p556_p9 = pnand %p555_p8, %p549_p5 }
  0x31   :  { %559 = shalt.err (!%p556_p9)
}
  0x32   :  { %45 = dma.hbm_to_vmem [thread:$0]  %s720_s2, 2048, %s40_s6, [#allocation6], %s589_s25, %s589_s25, %s590_s26  }
  0x33   :  { %582 = dma.done.wait [#allocation3], 128  }
  0x34   :  { %583 = vsyncadd [#allocation3], 4294967168 }
  0x35   :  { %584 = dma.done.wait [#allocation6], 4096  }
  0x36   :  { %585 = vsyncadd [#allocation6], 4294963200  ;;  %v593_v0 = vmov 0.0|0.0   ;;  %vm594_vm0 = vmmov 0   ;;  %v595_v1 = vmov 0.0   ;;  %vm74_vm1 = vcmask 523264  }
  0x37   :  { %429 = vmatprep.subr.bf16.mxu0 %v593_v0  ;;  %391 = vmatprep.mubr.msk.f32.mxu0 %vm594_vm0, %v595_v1  ;;  %v58_v2 = vld [vmem:[#allocation5] sm:$0xff]  ;;  %v59_v3 = vld [vmem:[#allocation5 + $0x8] sm:$0xff]  ;;  %vm668_vm2 = vmpackc.low %vm74_vm1, %vm74_vm1  ;;  %s596_s26 = smov [#allocation8]  }
  0x38   :  { %461 = vmatprep.subr.bf16.mxu1 %v593_v0  ;;  %426 = vmatprep.mubr.msk.f32.mxu1 %vm594_vm0, %v595_v1  ;;  %v430_v5 = vpack.c.bf16 %v59_v3, %v58_v2  ;;  %v60_v6 = vld [vmem:[#allocation5 + $0x10] sm:$0xff]  ;;  %v61_v7 = vld [vmem:[#allocation5 + $0x18] sm:$0xff]  ;;  %v197_v8 = vld [vmem:[#allocation7] sm:$0xff]  ;;  %s297_s27 = sshll.u32 %s596_s26, 4  ;;  %s298_s27 = int_to_ptr.vmem [resolvable:$true] %s297_s27 }
  0x39   :  { %v198_v9 = vld [vmem:[#allocation7 + $0x8] sm:$0xff]  ;;  %v434_v10 = vpack.c.bf16 %v61_v7, %v60_v6  ;;  %v199_v12 = vld [vmem:[#allocation7 + $0x10] sm:$0xff]  ;;  %v200_v13 = vld [vmem:[#allocation7 + $0x18] sm:$0xff]  ;;  %s560_s28 = scalar_lea.vmem %s298_s27, 128  ;;  %p565_p11 = scmp.lt.s32.totalorder %s298_s27, %s298_s27 }
  0x3a   :  { %432 = vmatpush3.bf16.xpose.msk.msra.mxu0 %vm668_vm2, %v430_v5  ;;  %v462_v11 = vpack.c.bf16 %v198_v9, %v197_v8  ;;  %v62_v14 = vld [vmem:[#allocation5 + $0x20] sm:$0xff]  ;;  %v63_v15 = vld [vmem:[#allocation5 + $0x28] sm:$0xff]  ;;  %v465_v16 = vpack.c.bf16 %v200_v13, %v199_v12  ;;  %v64_v20 = vld [vmem:[#allocation5 + $0x30] sm:$0xff]  ;;  %p561_p10 = scmp.ne.s32.totalorder %s298_s27, %s560_s28  ;;  %p566_p12 = scmp.lt.s32.totalorder %s560_s28, %s560_s28 }
  0x3b   :  { %433 = vmatprep.subr.bf16.mxu0 %v593_v0  ;;  %v438_v17 = vpack.c.bf16 %v63_v15, %v62_v14  ;;  %v201_v18 = vld [vmem:[#allocation7 + $0x20] sm:$0xff]  ;;  %v202_v19 = vld [vmem:[#allocation7 + $0x28] sm:$0xff]  ;;  %v65_v21 = vld [vmem:[#allocation5 + $0x38] sm:$0xff] }
  0x3c   :  { %463 = vmatpush3.bf16.xpose.msra.mxu1 %v462_v11  ;;  %v468_v22 = vpack.c.bf16 %v202_v19, %v201_v18  ;;  %v442_v23 = vpack.c.bf16 %v65_v21, %v64_v20  ;;  %v203_v24 = vld [vmem:[#allocation7 + $0x30] sm:$0xff]  ;;  %v204_v25 = vld [vmem:[#allocation7 + $0x38] sm:$0xff]  ;;  %v66_v26 = vld [vmem:[#allocation5 + $0x40] sm:$0xff]  ;;  %p567_p13 = por %p566_p12, %p565_p11 }
  0x3d   :  { %464 = vmatprep.subr.bf16.mxu1 %v593_v0  ;;  %v67_v27 = vld [vmem:[#allocation5 + $0x48] sm:$0xff]  ;;  %v471_v28 = vpack.c.bf16 %v204_v25, %v203_v24  ;;  %v205_v30 = vld [vmem:[#allocation7 + $0x40] sm:$0xff]  ;;  %v68_v32 = vld [vmem:[#allocation5 + $0x50] sm:$0xff] }
  0x3e   :  { %v446_v29 = vpack.c.bf16 %v67_v27, %v66_v26  ;;  %v206_v31 = vld [vmem:[#allocation7 + $0x48] sm:$0xff]  ;;  %v69_v33 = vld [vmem:[#allocation5 + $0x58] sm:$0xff]  ;;  %v207_v36 = vld [vmem:[#allocation7 + $0x50] sm:$0xff]  ;;  %p568_p0 = pnand %p567_p13, %p561_p10 }
  0x3f   :  { %v474_v34 = vpack.c.bf16 %v206_v31, %v205_v30  ;;  %v450_v35 = vpack.c.bf16 %v69_v33, %v68_v32  ;;  %v208_v37 = vld [vmem:[#allocation7 + $0x58] sm:$0xff]  ;;  %v70_v38 = vld [vmem:[#allocation5 + $0x60] sm:$0xff]  ;;  %v71_v39 = vld [vmem:[#allocation5 + $0x68] sm:$0xff] }
  0x40   :  { %v477_v40 = vpack.c.bf16 %v208_v37, %v207_v36  ;;  %v454_v41 = vpack.c.bf16 %v71_v39, %v70_v38  ;;  %v209_v42 = vld [vmem:[#allocation7 + $0x60] sm:$0xff]  ;;  %v210_v43 = vld [vmem:[#allocation7 + $0x68] sm:$0xff]  ;;  %v72_v44 = vld [vmem:[#allocation5 + $0x70] sm:$0xff] }
  0x41   :  { %v73_v45 = vld [vmem:[#allocation5 + $0x78] sm:$0xff]  ;;  %v480_v46 = vpack.c.bf16 %v210_v43, %v209_v42  ;;  %v211_v48 = vld [vmem:[#allocation7 + $0x70] sm:$0xff] }
  0x42   :  { %436 = vmatpush3.bf16.xpose.msk.msra.mxu0 %vm668_vm2, %v434_v10  ;;  %v458_v47 = vpack.c.bf16 %v73_v45, %v72_v44  ;;  %v212_v49 = vld [vmem:[#allocation7 + $0x78] sm:$0xff] }
  0x43   :  { %437 = vmatprep.subr.bf16.mxu0 %v593_v0  ;;  %v483_v50 = vpack.c.bf16 %v212_v49, %v211_v48  ;;  %v57_v51 = vld [vmem:[#allocation2] sm:$0xff] }
  0x44   :  { %466 = vmatpush3.bf16.xpose.msra.mxu1 %v465_v16  ;;  %v324_v55 = vld [vmem:[%s721_s3] ss:$0 sm:$0xff] }
  0x45   :  { %467 = vmatprep.subr.bf16.mxu1 %v593_v0 }
  0x4a   :  { %440 = vmatpush3.bf16.xpose.msk.msra.mxu0 %vm668_vm2, %v438_v17 }
  0x4b   :  { %441 = vmatprep.subr.bf16.mxu0 %v593_v0 }
  0x4c   :  { %469 = vmatpush3.bf16.xpose.msra.mxu1 %v468_v22 }
  0x4d   :  { %470 = vmatprep.subr.bf16.mxu1 %v593_v0 }
  0x52   :  { %444 = vmatpush3.bf16.xpose.msk.msra.mxu0 %vm668_vm2, %v442_v23 }
  0x53   :  { %445 = vmatprep.subr.bf16.mxu0 %v593_v0 }
  0x54   :  { %472 = vmatpush3.bf16.xpose.msra.mxu1 %v471_v28 }
  0x55   :  { %473 = vmatprep.subr.bf16.mxu1 %v593_v0 }
  0x5a   :  { %448 = vmatpush3.bf16.xpose.msk.msra.mxu0 %vm668_vm2, %v446_v29 }
  0x5b   :  { %449 = vmatprep.subr.bf16.mxu0 %v593_v0 }
  0x5c   :  { %475 = vmatpush3.bf16.xpose.msra.mxu1 %v474_v34 }
  0x5d   :  { %476 = vmatprep.subr.bf16.mxu1 %v593_v0 }
  0x62   :  { %452 = vmatpush3.bf16.xpose.msk.msra.mxu0 %vm668_vm2, %v450_v35 }
  0x63   :  { %453 = vmatprep.subr.bf16.mxu0 %v593_v0 }
  0x64   :  { %478 = vmatpush3.bf16.xpose.msra.mxu1 %v477_v40 }
  0x65   :  { %479 = vmatprep.subr.bf16.mxu1 %v593_v0 }
  0x6a   :  { %456 = vmatpush3.bf16.xpose.msk.msra.mxu0 %vm668_vm2, %v454_v41 }
  0x6b   :  { %457 = vmatprep.subr.bf16.mxu0 %v593_v0 }
  0x6c   :  { %481 = vmatpush3.bf16.xpose.msra.mxu1 %v480_v46 }
  0x6d   :  { %482 = vmatprep.subr.bf16.mxu1 %v593_v0 }
  0x72   :  { %460 = vmatpush3.bf16.xpose.msk.msra.mxu0 %vm668_vm2, %v458_v47 }
  0x74   :  { %484 = vmatpush3.bf16.xpose.msra.mxu1 %v483_v50 }
  0x79   :  { %392 = vmatmul.mubr.msk.f32.vlgmr.msra.gmra.mrb[0].mxu0 %vm74_vm1, %v57_v51 }
 0x14c   :  { %v192_v52 = vpop.f32.mrb[0].mxu0 }
 0x14d   :  { %v196_v53 = vmax.f32 %v192_v52, 0.0  ;;  %v393_v54 = vpop.f32.mrb[1].mxu0 }
 0x14f   :  { %427 = vmatmul.mubr.f32.vlgmr.msra.gmra.mrb[0].mxu1 %v196_v53 }
 0x222   :  { %v286_v56 = vpop.f32.mrb[0].mxu1 }
 0x223   :  { %v287_v57 = vadd.f32 %v324_v55, %v286_v56  ;;  %v428_v58 = vpop.f32.mrb[1].mxu1 }
 0x225   :  { %290 = vst [vmem:[#allocation8] sm:$0xff] %v287_v57 }
 0x226   :  { %571 = shalt.err (!%p568_p0)
}
 0x227   :  { %s572_s5 = scalar_lea.hbm %s722_s4, 128 }
 0x228   :  { %p573_p1 = scmp.ne.s32.totalorder %s722_s4, %s572_s5  ;;  %p576_p2 = scmp.lt.u32.totalorder %s572_s5, %s722_s4 }
 0x22a   :  { %p578_p3 = pnand %p576_p2, %p573_p1 }
 0x22c   :  { %581 = shalt.err (!%p578_p3)
}
 0x22d   :  { %300 = dma.vmem_to_hbm [thread:$0]  %s298_s27, 128, %s722_s4, [#allocation4]  }
 0x22e   :  { %586 = dma.done.wait [#allocation4], 128  }
 0x22f   :  { %587 = vsyncadd [#allocation4], 4294967168 }
 0x230   :  { %304 = vsyncpa [#allocation3], 1 }
 0x231   :  { %305 = vsyncpa [#allocation6], 1 }
 0x232   :  { %306 = vsyncpa [#allocation4], 1 }

</bundles_post_ra>
